<compile_context>
chip_gen: v7x
topology: tpu7x:2x2x1
jax: 0.10.0
libtpu: 0.0.40
codegen_flags: <defaults>
</compile_context>

<pallas_src>
import jax
import jax.numpy as jnp
from jax.experimental import pallas as pl
from jax.experimental.pallas import tpu as pltpu


def _round_up(n, m):
    return ((n + m - 1) // m) * m


# ----------------------------- kernels --------------------------------------

def mlp_resident_kernel(x_ref, w1_ref, b1_ref, w2_ref, b2_ref, o_ref):
    """Full weights resident in VMEM; grid is 1-D over batch tiles."""
    # fc_1: bf16 x @ bf16 W1 with f32 accumulation on the MXU.
    h = jnp.dot(x_ref[...], w1_ref[...], preferred_element_type=jnp.float32)
    # TODO(synk): dropout is identity (eval mode); training-mode dropout would
    # use pltpu.prng_seed + pltpu.stateful_bernoulli with 1/(1-p) scaling.
    h = jnp.maximum(h + b1_ref[...], 0.0)                 # bias + ReLU in f32
    out = jnp.dot(h.astype(w2_ref.dtype), w2_ref[...],
                  preferred_element_type=jnp.float32)
    o_ref[...] = (out + b2_ref[...]).astype(o_ref.dtype)


def mlp_hidden_tiled_kernel(x_ref, w1_ref, b1_ref, w2_ref, b2_ref, o_ref, acc_ref):
    """Hidden dim streamed in tiles (inner 'arbitrary' axis); f32 accumulator."""
    j = pl.program_id(1)

    @pl.when(j == 0)
    def _():
        acc_ref[...] = jnp.zeros_like(acc_ref)

    h = jnp.dot(x_ref[...], w1_ref[...], preferred_element_type=jnp.float32)
    h = jnp.maximum(h + b1_ref[...], 0.0)    # ReLU is elementwise -> tile-safe
    acc_ref[...] += jnp.dot(h.astype(w2_ref.dtype), w2_ref[...],
                            preferred_element_type=jnp.float32)

    @pl.when(j == pl.num_programs(1) - 1)
    def _():
        o_ref[...] = (acc_ref[...] + b2_ref[...]).astype(o_ref.dtype)


# --------------------------- host-side helpers -------------------------------

def prepare_params(w1, b1, w2, b2, *, hn_align=128):
    """One-time weight padding + bf16 cast (hoisted out of the forward pass).

    hn_align: lane alignment of hidden/output dims. 128 = vreg lane width;
    pass 256 on v6e/v7x to fill the 2x256x256 MXU.
    """
    input_dim, hidden_dim = w1.shape
    output_dim = w2.shape[1]
    k_pad = _round_up(input_dim, 128)
    h_pad = _round_up(hidden_dim, hn_align)
    n_pad = _round_up(output_dim, hn_align)

    bf16, f32 = jnp.bfloat16, jnp.float32
    b1 = jnp.reshape(b1, (1, -1))
    b2 = jnp.reshape(b2, (1, -1))
    w1p = jnp.zeros((k_pad, h_pad), bf16).at[:input_dim, :hidden_dim].set(w1.astype(bf16))
    b1p = jnp.zeros((1, h_pad), f32).at[:, :hidden_dim].set(b1.astype(f32))
    w2p = jnp.zeros((h_pad, n_pad), bf16).at[:hidden_dim, :output_dim].set(w2.astype(bf16))
    b2p = jnp.zeros((1, n_pad), f32).at[:, :output_dim].set(b2.astype(f32))
    meta = dict(input_dim=input_dim, hidden_dim=hidden_dim, output_dim=output_dim,
                k_pad=k_pad, h_pad=h_pad, n_pad=n_pad)
    return (w1p, b1p, w2p, b2p), meta


def _choose_batch_tile(batch, tile_m):
    """Pick the batch tile AFTER 16-row alignment so we don't pad up to a full
    max-size tile (e.g. batch=257 -> tm=64/m_pad=320, not m_pad=512)."""
    tile_m = max(16, tile_m)
    cands, t = [], 16
    while t <= tile_m:
        cands.append(t)
        t *= 2
    best = None
    for t in reversed(cands):                 # prefer larger tiles on ties
        m_pad = _round_up(batch, t)
        cost = m_pad + 8 * (m_pad // t)       # padded rows + per-step overhead
        if best is None or cost < best[0]:
            best = (cost, t, m_pad)
    return best[1], best[2]


def _run_with_single_buffered_weights(run):
    """Single-buffer the constant-index weight blocks (halves their VMEM).
    Fall back to default double-buffering if this jax rejects Buffered(1)."""
    try:
        return run(pl.Buffered(buffer_count=1))
    except Exception:
        return run(None)


def mlp_forward(x, params, meta, *, tile_m=256, tile_h=512,
                weight_resident_budget=48 << 20, out_dtype=None):
    """Forward pass. `params`/`meta` come from prepare_params (call once)."""
    w1p, b1p, w2p, b2p = params
    batch, input_dim = x.shape
    assert input_dim == meta["input_dim"]
    k_pad, h_pad, n_pad = meta["k_pad"], meta["h_pad"], meta["n_pad"]
    output_dim = meta["output_dim"]
    out_dtype = x.dtype if out_dtype is None else jnp.dtype(out_dtype)
    out_isize = jnp.dtype(out_dtype).itemsize

    tm, m_pad = _choose_batch_tile(batch, tile_m)
    n_m_tiles = m_pad // tm

    bf16 = jnp.bfloat16
    if m_pad == batch and k_pad == input_dim:
        xp = x.astype(bf16)                     # already aligned: cast only
    else:
        xp = jnp.zeros((m_pad, k_pad), bf16).at[:batch, :input_dim].set(x.astype(bf16))

    weight_bytes = 2 * (k_pad * h_pad + h_pad * n_pad) + 4 * (h_pad + n_pad)
    cost = pl.CostEstimate(
        flops=2 * m_pad * (k_pad * h_pad + h_pad * n_pad),
        transcendentals=0,
        bytes_accessed=int(xp.size * 2 + weight_bytes + m_pad * n_pad * out_isize))
    out_shape = jax.ShapeDtypeStruct((m_pad, n_pad), out_dtype)

    if weight_bytes <= weight_resident_budget:
        # ---------------- resident-weights path (v5e/v6e default) -----------
        footprint = (weight_bytes                    # single-buffered weights
                     + 2 * tm * k_pad * 2            # double-buffered x tile
                     + 2 * tm * n_pad * out_isize    # double-buffered out tile
                     + tm * h_pad * 4)               # live f32 intermediate
        vmem_limit = min(max(int(1.5 * footprint) + (4 << 20), 32 << 20), 96 << 20)

        def run(weight_mode):
            return pl.pallas_call(
                mlp_resident_kernel,
                out_shape=out_shape,
                grid=(n_m_tiles,),
                in_specs=[
                    pl.BlockSpec((tm, k_pad), lambda i: (i, 0)),
                    pl.BlockSpec((k_pad, h_pad), lambda i: (0, 0),
                                 pipeline_mode=weight_mode),
                    pl.BlockSpec((1, h_pad), lambda i: (0, 0),
                                 pipeline_mode=weight_mode),
                    pl.BlockSpec((h_pad, n_pad), lambda i: (0, 0),
                                 pipeline_mode=weight_mode),
                    pl.BlockSpec((1, n_pad), lambda i: (0, 0),
                                 pipeline_mode=weight_mode),
                ],
                out_specs=pl.BlockSpec((tm, n_pad), lambda i: (i, 0)),
                compiler_params=pltpu.CompilerParams(
                    dimension_semantics=("parallel",),
                    vmem_limit_bytes=vmem_limit),
                cost_estimate=cost,
            )(xp, w1p, b1p, w2p, b2p)

        out_padded = _run_with_single_buffered_weights(run)
    else:
        # ------------- hidden-tiled path (large weights / v7x 64 MiB) -------
        th = min(_round_up(tile_h, 128), h_pad)
        while h_pad % th:
            th -= 128                              # h_pad % 128 == 0 -> terminates
        n_h_tiles = h_pad // th

        footprint = (2 * tm * k_pad * 2                               # x tile
                     + 2 * (k_pad * th * 2 + th * 4 + th * n_pad * 2)  # W1/b1/W2
                     + n_pad * 4                                      # b2
                     + 2 * tm * n_pad * out_isize                     # out tile
                     + tm * n_pad * 4                                 # f32 acc
                     + tm * th * 4)                                   # f32 interm.
        vmem_limit = min(max(int(1.5 * footprint) + (4 << 20), 32 << 20), 96 << 20)

        def run(weight_mode):
            return pl.pallas_call(
                mlp_hidden_tiled_kernel,
                out_shape=out_shape,
                grid=(n_m_tiles, n_h_tiles),
                in_specs=[
                    pl.BlockSpec((tm, k_pad), lambda i, j: (i, 0)),
                    pl.BlockSpec((k_pad, th), lambda i, j: (0, j)),
                    pl.BlockSpec((1, th), lambda i, j: (0, j)),
                    pl.BlockSpec((th, n_pad), lambda i, j: (j, 0)),
                    pl.BlockSpec((1, n_pad), lambda i, j: (0, 0),
                                 pipeline_mode=weight_mode),
                ],
                out_specs=pl.BlockSpec((tm, n_pad), lambda i, j: (i, 0)),
                scratch_shapes=[pltpu.VMEM((tm, n_pad), jnp.float32)],
                compiler_params=pltpu.CompilerParams(
                    dimension_semantics=("parallel", "arbitrary"),
                    vmem_limit_bytes=vmem_limit),
                cost_estimate=cost,
            )(xp, w1p, b1p, w2p, b2p)

        out_padded = _run_with_single_buffered_weights(run)

    if m_pad == batch and n_pad == output_dim:
        return out_padded                          # aligned: skip the slice
    # Padded batch rows hold relu(b1)@W2+b2 garbage -> must be sliced off.
    return out_padded[:batch, :output_dim]


# ------------------------------ test harness ---------------------------------

def init_params(key, input_dim, hidden_dim, output_dim, dtype=jnp.float32):
    # Mirror nn.Linear default init: U(-1/sqrt(fan_in), 1/sqrt(fan_in)).
    k1, k2, k3, k4 = jax.random.split(key, 4)
    bound1 = 1.0 / (input_dim ** 0.5)
    bound2 = 1.0 / (hidden_dim ** 0.5)
    w1 = jax.random.uniform(k1, (input_dim, hidden_dim), dtype, -bound1, bound1)
    b1 = jax.random.uniform(k2, (hidden_dim,), dtype, -bound1, bound1)
    w2 = jax.random.uniform(k3, (hidden_dim, output_dim), dtype, -bound2, bound2)
    b2 = jax.random.uniform(k4, (output_dim,), dtype, -bound2, bound2)
    return w1, b1, w2, b2


def mlp_reference(x, w1, b1, w2, b2):
    # Pure-JAX reference with matched bf16 operand precision / f32 accumulation.
    bf16 = jnp.bfloat16
    h = jnp.dot(x.astype(bf16), w1.astype(bf16),
                preferred_element_type=jnp.float32) + b1.reshape(1, -1)
    h = jnp.maximum(h, 0.0)
    return (jnp.dot(h.astype(bf16), w2.astype(bf16),
                    preferred_element_type=jnp.float32) + b2.reshape(1, -1))


if __name__ == "__main__":
    key = jax.random.PRNGKey(0)
    kp1, kx1, kp2, kx2 = jax.random.split(key, 4)

    # --- Test 1: small MLP, resident-weights path (default) ---
    batch, input_dim, hidden_dim, output_dim = 8, 32, 64, 16
    w1, b1, w2, b2 = init_params(kp1, input_dim, hidden_dim, output_dim)
    x = jax.random.normal(kx1, (batch, input_dim), jnp.float32)
    params, meta = prepare_params(w1, b1, w2, b2)       # one-time weight prep
    out = mlp_forward(x, params, meta)
    jax.block_until_ready(out)
    ref = mlp_reference(x, w1, b1, w2, b2)
    assert out.shape == (batch, output_dim)
    err1 = float(jnp.max(jnp.abs(out - ref)))
    assert jnp.allclose(out, ref, atol=2e-3, rtol=2e-3), err1

    # --- Test 2: uneven batch + forced hidden-tiled accumulator path ---
    batch2, input_dim2, hidden_dim2, output_dim2 = 17, 32, 256, 16
    w1b, b1b, w2b, b2b = init_params(kp2, input_dim2, hidden_dim2, output_dim2)
    x2 = jax.random.normal(kx2, (batch2, input_dim2), jnp.float32)
    params2, meta2 = prepare_params(w1b, b1b, w2b, b2b)
    out2 = mlp_forward(x2, params2, meta2, weight_resident_budget=0, tile_h=128)
    jax.block_until_ready(out2)
    ref2 = mlp_reference(x2, w1b, b1b, w2b, b2b)
    assert out2.shape == (batch2, output_dim2)
    err2 = float(jnp.max(jnp.abs(out2 - ref2)))
    assert jnp.allclose(out2, ref2, atol=2e-3, rtol=2e-3), err2

    print("KERNEL_OK")
</pallas_src>

<mosaic_0001>
module attributes {stable_mosaic.version = 11 : i64} {
  func.func @mlp_resident_kernel(%arg0: i32, %arg1: memref<16x128xbf16, #tpu.memory_space<vmem>>, %arg2: memref<128x128xbf16, #tpu.memory_space<vmem>>, %arg3: memref<1x128xf32, #tpu.memory_space<vmem>>, %arg4: memref<128x128xbf16, #tpu.memory_space<vmem>>, %arg5: memref<1x128xf32, #tpu.memory_space<vmem>>, %arg6: memref<16x128xf32, #tpu.memory_space<vmem>>) attributes {dimension_semantics = [#tpu.dimension_semantics<parallel>], iteration_bounds = array<i64: 1>, scalar_prefetch = 0 : i64, scratch_operands = 0 : i64, tpu.core_type = #tpu.core_type<tc>, window_params = [{transform_indices = @transform_0, window_bounds = array<i64: 16, 128>}, {pipeline_mode = #tpu.pipeline_mode<synchronous>, transform_indices = @transform_1, window_bounds = array<i64: 128, 128>}, {pipeline_mode = #tpu.pipeline_mode<synchronous>, transform_indices = @transform_2, window_bounds = array<i64: 1, 128>}, {pipeline_mode = #tpu.pipeline_mode<synchronous>, transform_indices = @transform_3, window_bounds = array<i64: 128, 128>}, {pipeline_mode = #tpu.pipeline_mode<synchronous>, transform_indices = @transform_4, window_bounds = array<i64: 1, 128>}, {transform_indices = @transform_5, window_bounds = array<i64: 16, 128>}]} {
    %c0 = arith.constant 0 : index
    %c0_0 = arith.constant 0 : index
    %0 = vector.load %arg1[%c0, %c0_0] : memref<16x128xbf16, #tpu.memory_space<vmem>>, vector<16x128xbf16>
    %c0_1 = arith.constant 0 : index
    %c0_2 = arith.constant 0 : index
    %1 = vector.load %arg2[%c0_1, %c0_2] : memref<128x128xbf16, #tpu.memory_space<vmem>>, vector<128x128xbf16>
    %cst = arith.constant dense<0.000000e+00> : vector<16x128xf32>
    %2 = tpu.matmul %0, %1, %cst {dimension_numbers = #tpu.dot_dimension_numbers<[1], [0], [0], [1], [0, 0, 1, 1], [], []>} : vector<16x128xbf16>, vector<128x128xbf16>, vector<16x128xf32> -> vector<16x128xf32>
    %c0_3 = arith.constant 0 : index
    %c0_4 = arith.constant 0 : index
    %3 = vector.load %arg3[%c0_3, %c0_4] : memref<1x128xf32, #tpu.memory_space<vmem>>, vector<1x128xf32>
    %4 = vector.broadcast %3 : vector<1x128xf32> to vector<16x128xf32>
    %5 = arith.addf %2, %4 : vector<16x128xf32>
    %cst_5 = arith.constant 0.000000e+00 : f32
    %6 = vector.broadcast %cst_5 : f32 to vector<16x128xf32>
    %7 = arith.maximumf %5, %6 : vector<16x128xf32>
    %8 = arith.truncf %7 : vector<16x128xf32> to vector<16x128xbf16>
    %c0_6 = arith.constant 0 : index
    %c0_7 = arith.constant 0 : index
    %9 = vector.load %arg4[%c0_6, %c0_7] : memref<128x128xbf16, #tpu.memory_space<vmem>>, vector<128x128xbf16>
    %cst_8 = arith.constant dense<0.000000e+00> : vector<16x128xf32>
    %10 = tpu.matmul %8, %9, %cst_8 {dimension_numbers = #tpu.dot_dimension_numbers<[1], [0], [0], [1], [0, 0, 1, 1], [], []>} : vector<16x128xbf16>, vector<128x128xbf16>, vector<16x128xf32> -> vector<16x128xf32>
    %c0_9 = arith.constant 0 : index
    %c0_10 = arith.constant 0 : index
    %11 = vector.load %arg5[%c0_9, %c0_10] : memref<1x128xf32, #tpu.memory_space<vmem>>, vector<1x128xf32>
    %12 = vector.broadcast %11 : vector<1x128xf32> to vector<16x128xf32>
    %13 = arith.addf %10, %12 : vector<16x128xf32>
    %c0_11 = arith.constant 0 : index
    %c0_12 = arith.constant 0 : index
    %14 = vector.load %arg6[%c0_11, %c0_12] : memref<16x128xf32, #tpu.memory_space<vmem>>, vector<16x128xf32>
    tpu.vector_store %arg6[%c0_11, %c0_12], %13 {strides = array<i32>} : memref<16x128xf32, #tpu.memory_space<vmem>>, vector<16x128xf32>,
    return
  }
  func.func @transform_0(%arg0: i32) -> (i32, i32) {
    %c0_i32 = arith.constant 0 : i32
    %c0_i32_0 = arith.constant 0 : i32
    return %arg0, %c0_i32 : i32, i32
  }
  func.func @transform_1(%arg0: i32) -> (i32, i32) {
    %c0_i32 = arith.constant 0 : i32
    %c0_i32_0 = arith.constant 0 : i32
    %c0_i32_1 = arith.constant 0 : i32
    return %c0_i32, %c0_i32_0 : i32, i32
  }
  func.func @transform_2(%arg0: i32) -> (i32, i32) {
    %c0_i32 = arith.constant 0 : i32
    %c0_i32_0 = arith.constant 0 : i32
    %c0_i32_1 = arith.constant 0 : i32
    return %c0_i32, %c0_i32_0 : i32, i32
  }
  func.func @transform_3(%arg0: i32) -> (i32, i32) {
    %c0_i32 = arith.constant 0 : i32
    %c0_i32_0 = arith.constant 0 : i32
    %c0_i32_1 = arith.constant 0 : i32
    return %c0_i32, %c0_i32_0 : i32, i32
  }
  func.func @transform_4(%arg0: i32) -> (i32, i32) {
    %c0_i32 = arith.constant 0 : i32
    %c0_i32_0 = arith.constant 0 : i32
    %c0_i32_1 = arith.constant 0 : i32
    return %c0_i32, %c0_i32_0 : i32, i32
  }
  func.func @transform_5(%arg0: i32) -> (i32, i32) {
    %c0_i32 = arith.constant 0 : i32
    %c0_i32_0 = arith.constant 0 : i32
    return %arg0, %c0_i32 : i32, i32
  }
}

module attributes {stable_mosaic.version = 11 : i64} {
  func.func @mlp_resident_kernel(%arg0: i32, %arg1: memref<16x128xbf16, #tpu.memory_space<vmem>>, %arg2: memref<128x128xbf16, #tpu.memory_space<vmem>>, %arg3: memref<1x128xf32, #tpu.memory_space<vmem>>, %arg4: memref<128x128xbf16, #tpu.memory_space<vmem>>, %arg5: memref<1x128xf32, #tpu.memory_space<vmem>>, %arg6: memref<16x128xf32, #tpu.memory_space<vmem>>) attributes {dimension_semantics = [#tpu.dimension_semantics<parallel>], iteration_bounds = array<i64: 1>, scalar_prefetch = 0 : i64, scratch_operands = 0 : i64, tpu.core_type = #tpu.core_type<tc>, window_params = [{transform_indices = @transform_0, window_bounds = array<i64: 16, 128>}, {pipeline_mode = #tpu.pipeline_mode<synchronous>, transform_indices = @transform_1, window_bounds = array<i64: 128, 128>}, {pipeline_mode = #tpu.pipeline_mode<synchronous>, transform_indices = @transform_2, window_bounds = array<i64: 1, 128>}, {pipeline_mode = #tpu.pipeline_mode<synchronous>, transform_indices = @transform_3, window_bounds = array<i64: 128, 128>}, {pipeline_mode = #tpu.pipeline_mode<synchronous>, transform_indices = @transform_4, window_bounds = array<i64: 1, 128>}, {transform_indices = @transform_5, window_bounds = array<i64: 16, 128>}]} {
    %c0 = arith.constant 0 : index
    %c0_0 = arith.constant 0 : index
    %0 = vector.load %arg1[%c0, %c0_0] : memref<16x128xbf16, #tpu.memory_space<vmem>>, vector<16x128xbf16>
    %c0_1 = arith.constant 0 : index
    %c0_2 = arith.constant 0 : index
    %1 = vector.load %arg2[%c0_1, %c0_2] : memref<128x128xbf16, #tpu.memory_space<vmem>>, vector<128x128xbf16>
    %cst = arith.constant dense<0.000000e+00> : vector<16x128xf32>
    %2 = tpu.matmul %0, %1, %cst {dimension_numbers = #tpu.dot_dimension_numbers<[1], [0], [0], [1], [0, 0, 1, 1], [], []>} : vector<16x128xbf16>, vector<128x128xbf16>, vector<16x128xf32> -> vector<16x128xf32>
    %c0_3 = arith.constant 0 : index
    %c0_4 = arith.constant 0 : index
    %3 = vector.load %arg3[%c0_3, %c0_4] : memref<1x128xf32, #tpu.memory_space<vmem>>, vector<1x128xf32>
    %4 = vector.broadcast %3 : vector<1x128xf32> to vector<16x128xf32>
    %5 = arith.addf %2, %4 : vector<16x128xf32>
    %cst_5 = arith.constant 0.000000e+00 : f32
    %6 = vector.broadcast %cst_5 : f32 to vector<16x128xf32>
    %7 = arith.maximumf %5, %6 : vector<16x128xf32>
    %8 = arith.truncf %7 : vector<16x128xf32> to vector<16x128xbf16>
    %c0_6 = arith.constant 0 : index
    %c0_7 = arith.constant 0 : index
    %9 = vector.load %arg4[%c0_6, %c0_7] : memref<128x128xbf16, #tpu.memory_space<vmem>>, vector<128x128xbf16>
    %cst_8 = arith.constant dense<0.000000e+00> : vector<16x128xf32>
    %10 = tpu.matmul %8, %9, %cst_8 {dimension_numbers = #tpu.dot_dimension_numbers<[1], [0], [0], [1], [0, 0, 1, 1], [], []>} : vector<16x128xbf16>, vector<128x128xbf16>, vector<16x128xf32> -> vector<16x128xf32>
    %c0_9 = arith.constant 0 : index
    %c0_10 = arith.constant 0 : index
    %11 = vector.load %arg5[%c0_9, %c0_10] : memref<1x128xf32, #tpu.memory_space<vmem>>, vector<1x128xf32>
    %12 = vector.broadcast %11 : vector<1x128xf32> to vector<16x128xf32>
    %13 = arith.addf %10, %12 : vector<16x128xf32>
    %c0_11 = arith.constant 0 : index
    %c0_12 = arith.constant 0 : index
    %14 = vector.load %arg6[%c0_11, %c0_12] : memref<16x128xf32, #tpu.memory_space<vmem>>, vector<16x128xf32>
    tpu.vector_store %arg6[%c0_11, %c0_12], %13 {strides = array<i32>} : memref<16x128xf32, #tpu.memory_space<vmem>>, vector<16x128xf32>,
    return
  }
  func.func @transform_0(%arg0: i32) -> (i32, i32) {
    %c0_i32 = arith.constant 0 : i32
    %c0_i32_0 = arith.constant 0 : i32
    return %arg0, %c0_i32 : i32, i32
  }
  func.func @transform_1(%arg0: i32) -> (i32, i32) {
    %c0_i32 = arith.constant 0 : i32
    %c0_i32_0 = arith.constant 0 : i32
    %c0_i32_1 = arith.constant 0 : i32
    return %c0_i32, %c0_i32_0 : i32, i32
  }
  func.func @transform_2(%arg0: i32) -> (i32, i32) {
    %c0_i32 = arith.constant 0 : i32
    %c0_i32_0 = arith.constant 0 : i32
    %c0_i32_1 = arith.constant 0 : i32
    return %c0_i32, %c0_i32_0 : i32, i32
  }
  func.func @transform_3(%arg0: i32) -> (i32, i32) {
    %c0_i32 = arith.constant 0 : i32
    %c0_i32_0 = arith.constant 0 : i32
    %c0_i32_1 = arith.constant 0 : i32
    return %c0_i32, %c0_i32_0 : i32, i32
  }
  func.func @transform_4(%arg0: i32) -> (i32, i32) {
    %c0_i32 = arith.constant 0 : i32
    %c0_i32_0 = arith.constant 0 : i32
    %c0_i32_1 = arith.constant 0 : i32
    return %c0_i32, %c0_i32_0 : i32, i32
  }
  func.func @transform_5(%arg0: i32) -> (i32, i32) {
    %c0_i32 = arith.constant 0 : i32
    %c0_i32_0 = arith.constant 0 : i32
    return %arg0, %c0_i32 : i32, i32
  }
}

</mosaic_0001>

<bundles_post_ra>
// kernel: tpu_custom_call.1
= control target key start
LH: loop header
LB: loop body
LE: loop exit
PB: predicated region body
PF: predicated region fallthrough
CT: control target
= control target key end

     0   :  { %10 = vsyncpa [#allocation3], 0  ;;  %s626_s0 = inlined_call_operand.hbm [shape: bf16[16,128], index: 0, kind: input, shape index: {}]   ;;  %s627_s1 = inlined_call_operand.hbm [shape: bf16[128,128], index: 1, kind: input, shape index: {}]   ;;  %s628_s2 = inlined_call_operand.vmem [shape: f32[1,128], index: 2, kind: input, shape index: {}]   ;;  %s629_s3 = inlined_call_operand.hbm [shape: bf16[128,128], index: 3, kind: input, shape index: {}]   ;;  %s630_s4 = inlined_call_operand.vmem [shape: f32[1,128], index: 4, kind: input, shape index: {}]   ;;  %s631_s5 = inlined_call_operand.hbm [shape: f32[16,128], index: 5, kind: output, shape index: {}]  }
   0x1   :  { %11 = vsyncpa [#allocation6], 0 }
   0x2   :  { %12 = vsyncpa [#allocation4], 0  ;;  %s516_s18 = smov [#allocation5]   ;;  %s517_s20 = smov [#allocation2]  }
   0x3   :  { %s30_s19 = sshll.u32 %s516_s18, 4  ;;  %s18_s21 = sshll.u32 %s517_s20, 4  ;;  %s31_s19 = int_to_ptr.vmem [resolvable:$true] %s30_s19  ;;  %s556_s21 = int_to_ptr.vmem [resolvable:$true] %s18_s21 }
   0x4   :  { %s422_s24 = scalar_lea.hbm %s627_s1, 1024 }
   0x5   :  { %p423_p0 = scmp.ne.s32.totalorder %s627_s1, %s422_s24  ;;  %p426_p1 = scmp.lt.u32.totalorder %s422_s24, %s627_s1 }
   0x7   :  { %p428_p2 = pnand %p426_p1, %p423_p0 }
   0x9   :  { %431 = shalt.err (!%p428_p2)
}
   0xa   :  { %s432_s29 = scalar_lea.vmem %s31_s19, 1024  ;;  %p437_p4 = scmp.lt.s32.totalorder %s31_s19, %s31_s19 }
   0xb   :  { %p433_p3 = scmp.ne.s32.totalorder %s31_s19, %s432_s29  ;;  %p438_p5 = scmp.lt.s32.totalorder %s432_s29, %s432_s29 }
   0xd   :  { %p439_p6 = por %p438_p5, %p437_p4 }
   0xf   :  { %p440_p7 = pnand %p439_p6, %p433_p3 }
  0x11   :  { %443 = shalt.err (!%p440_p7)
}
  0x12   :  { %s518_s30 = smov 64   ;;  %s519_s6 = smov 4  }
  0x13   :  { %36 = dma.hbm_to_vmem [thread:$0]  %s627_s1, 1024, %s31_s19, [#allocation6], %s518_s30, %s518_s30, %s519_s6  }
  0x14   :  { %s444_s11 = scalar_lea.hbm %s626_s0, 128 }
  0x15   :  { %p445_p8 = scmp.ne.s32.totalorder %s626_s0, %s444_s11  ;;  %p448_p9 = scmp.lt.u32.totalorder %s444_s11, %s626_s0 }
  0x17   :  { %p450_p10 = pnand %p448_p9, %p445_p8 }
  0x19   :  { %453 = shalt.err (!%p450_p10)
}
  0x1a   :  { %s454_s16 = scalar_lea.vmem %s556_s21, 128  ;;  %p459_p12 = scmp.lt.s32.totalorder %s556_s21, %s556_s21 }
  0x1b   :  { %p455_p11 = scmp.ne.s32.totalorder %s556_s21, %s454_s16  ;;  %p460_p13 = scmp.lt.s32.totalorder %s454_s16, %s454_s16 }
  0x1d   :  { %p461_p0 = por %p460_p13, %p459_p12 }
  0x1f   :  { %p462_p1 = pnand %p461_p0, %p455_p11 }
  0x21   :  { %465 = shalt.err (!%p462_p1)
}
  0x22   :  { %24 = dma.hbm_to_vmem [thread:$0]  %s626_s0, 128, %s556_s21, [#allocation3], %s518_s30, %s518_s30, %s519_s6  }
  0x23   :  { %s520_s18 = smov [#allocation7]   ;;  %s466_s23 = scalar_lea.hbm %s629_s3, 1024 }
  0x24   :  { %s44_s19 = sshll.u32 %s520_s18, 4  ;;  %p467_p2 = scmp.ne.s32.totalorder %s629_s3, %s466_s23  ;;  %s45_s19 = int_to_ptr.vmem [resolvable:$true] %s44_s19 }
  0x25   :  { %p470_p3 = scmp.lt.u32.totalorder %s466_s23, %s629_s3 }
  0x27   :  { %p472_p4 = pnand %p470_p3, %p467_p2 }
  0x29   :  { %475 = shalt.err (!%p472_p4)
}
  0x2a   :  { %s476_s28 = scalar_lea.vmem %s45_s19, 1024  ;;  %p481_p6 = scmp.lt.s32.totalorder %s45_s19, %s45_s19 }
  0x2b   :  { %p477_p5 = scmp.ne.s32.totalorder %s45_s19, %s476_s28  ;;  %p482_p7 = scmp.lt.s32.totalorder %s476_s28, %s476_s28 }
  0x2d   :  { %p483_p8 = por %p482_p7, %p481_p6 }
  0x2f   :  { %p484_p9 = pnand %p483_p8, %p477_p5 }
  0x31   :  { %487 = shalt.err (!%p484_p9)
}
  0x32   :  { %50 = dma.hbm_to_vmem [thread:$0]  %s629_s3, 1024, %s45_s19, [#allocation6], %s518_s30, %s518_s30, %s519_s6  }
  0x33   :  { %510 = dma.done.wait [#allocation3], 128  }
  0x34   :  { %511 = vsyncadd [#allocation3], 4294967168 }
  0x35   :  { %512 = dma.done.wait [#allocation6], 2048  }
  0x36   :  { %513 = vsyncadd [#allocation6], 4294965248  ;;  %v521_v0 = vmov 0.0   ;;  %vm522_vm0 = vmmov 0   ;;  %v405_v1 = vld [vmem:[#allocation5] sm:$0xff]   ;;  %v406_v2 = vld [vmem:[#allocation5 + $0x8] sm:$0xff]  }
  0x37   :  { %355 = vmatprep.subr.bf16.mxu0 %v521_v0  ;;  %371 = vmatprep.mubr.msk.bf16.mxu0 %vm522_vm0, %v521_v0  ;;  %v407_v3 = vld [vmem:[#allocation5 + $0x10] sm:$0xff]   ;;  %v414_v4 = vld [vmem:[#allocation7] sm:$0xff]   ;;  %v408_v5 = vld [vmem:[#allocation5 + $0x18] sm:$0xff]   ;;  %s523_s7 = smov [#allocation8]  }
  0x38   :  { %375 = vmatprep.subr.bf16.mxu1 %v521_v0  ;;  %391 = vmatprep.mubr.msk.bf16.mxu1 %vm522_vm0, %v521_v0  ;;  %v415_v6 = vld [vmem:[#allocation7 + $0x8] sm:$0xff]   ;;  %v409_v7 = vld [vmem:[#allocation5 + $0x20] sm:$0xff]   ;;  %v416_v8 = vld [vmem:[#allocation7 + $0x10] sm:$0xff]   ;;  %s305_s8 = sshll.u32 %s523_s7, 4  ;;  %s306_s8 = int_to_ptr.vmem [resolvable:$true] %s305_s8 }
  0x39   :  { %356 = vmatpush3.bf16.msra.mxu0 %v405_v1  ;;  %376 = vmatpush3.bf16.msra.mxu1 %v414_v4  ;;  %v410_v9 = vld [vmem:[#allocation5 + $0x28] sm:$0xff]   ;;  %v417_v10 = vld [vmem:[#allocation7 + $0x18] sm:$0xff]   ;;  %v411_v11 = vld [vmem:[#allocation5 + $0x30] sm:$0xff]   ;;  %p493_p11 = scmp.lt.s32.totalorder %s306_s8, %s306_s8 }
  0x3a   :  { %357 = vmatprep.subr.bf16.mxu0 %v521_v0  ;;  %377 = vmatprep.subr.bf16.mxu1 %v521_v0  ;;  %v418_v12 = vld [vmem:[#allocation7 + $0x20] sm:$0xff]   ;;  %v412_v13 = vld [vmem:[#allocation5 + $0x38] sm:$0xff]   ;;  %v419_v14 = vld [vmem:[#allocation7 + $0x28] sm:$0xff]  }
  0x3b   :  { %v413_v15 = vld [vmem:[#allocation2] sm:$0xff]   ;;  %v420_v16 = vld [vmem:[#allocation7 + $0x30] sm:$0xff]  }
  0x3c   :  { %v421_v17 = vld [vmem:[#allocation7 + $0x38] sm:$0xff]  }
  0x3d   :  { %358 = vmatpush3.bf16.msra.mxu0 %v406_v2  ;;  %378 = vmatpush3.bf16.msra.mxu1 %v415_v6  ;;  %v318_v18 = vld [vmem:[%s628_s2] ss:$0 sm:$0xff]  ;;  %s488_s2 = scalar_lea.vmem %s306_s8, 256 }
  0x3e   :  { %359 = vmatprep.subr.bf16.mxu0 %v521_v0  ;;  %379 = vmatprep.subr.bf16.mxu1 %v521_v0  ;;  %v328_v28 = vld [vmem:[%s630_s4] ss:$0 sm:$0xff]  ;;  %p489_p10 = scmp.ne.s32.totalorder %s306_s8, %s488_s2  ;;  %p494_p12 = scmp.lt.s32.totalorder %s488_s2, %s488_s2 }
  0x40   :  { %p495_p13 = por %p494_p12, %p493_p11 }
  0x41   :  { %360 = vmatpush3.bf16.msra.mxu0 %v407_v3  ;;  %380 = vmatpush3.bf16.msra.mxu1 %v416_v8 }
  0x42   :  { %361 = vmatprep.subr.bf16.mxu0 %v521_v0  ;;  %381 = vmatprep.subr.bf16.mxu1 %v521_v0  ;;  %p496_p0 = pnand %p495_p13, %p489_p10 }
  0x45   :  { %362 = vmatpush3.bf16.msra.mxu0 %v408_v5  ;;  %382 = vmatpush3.bf16.msra.mxu1 %v417_v10 }
  0x46   :  { %363 = vmatprep.subr.bf16.mxu0 %v521_v0  ;;  %383 = vmatprep.subr.bf16.mxu1 %v521_v0 }
  0x49   :  { %364 = vmatpush3.bf16.msra.mxu0 %v409_v7  ;;  %384 = vmatpush3.bf16.msra.mxu1 %v418_v12 }
  0x4a   :  { %365 = vmatprep.subr.bf16.mxu0 %v521_v0  ;;  %385 = vmatprep.subr.bf16.mxu1 %v521_v0 }
  0x4d   :  { %366 = vmatpush3.bf16.msra.mxu0 %v410_v9  ;;  %386 = vmatpush3.bf16.msra.mxu1 %v419_v14 }
  0x4e   :  { %367 = vmatprep.subr.bf16.mxu0 %v521_v0  ;;  %387 = vmatprep.subr.bf16.mxu1 %v521_v0 }
  0x51   :  { %368 = vmatpush3.bf16.msra.mxu0 %v411_v11  ;;  %388 = vmatpush3.bf16.msra.mxu1 %v420_v16 }
  0x52   :  { %369 = vmatprep.subr.bf16.mxu0 %v521_v0  ;;  %389 = vmatprep.subr.bf16.mxu1 %v521_v0 }
  0x55   :  { %370 = vmatpush3.bf16.msra.mxu0 %v412_v13  ;;  %390 = vmatpush3.bf16.msra.mxu1 %v421_v17 }
  0x58   :  { %372 = vmatmul.mubr.bf16.vlgmr.msra.gmra.mrb[0].mxu0 %v413_v15 }
 0x12b   :  { %v176_v19 = vpop.f32.mrb[0].mxu0 }
 0x12c   :  { %v177_v20 = vadd.f32 %v318_v18, %v176_v19  ;;  %v373_v21 = vpop.f32.mrb[1].mxu0 }
 0x12d   :  { %v179_v22 = vpop.f32.mrb[2].mxu0 }
 0x12e   :  { %v180_v23 = vadd.f32 %v318_v18, %v179_v22  ;;  %v374_v24 = vpop.f32.mrb[3].mxu0  ;;  %v183_v25 = vmax.f32 %v177_v20, 0.0 }
 0x130   :  { %v184_v26 = vmax.f32 %v180_v23, 0.0 }
 0x132   :  { %v185_v27 = vpack.c.bf16 %v184_v26, %v183_v25 }
 0x134   :  { %392 = vmatmul.mubr.bf16.vlgmr.msra.gmra.mrb[0].mxu1 %v185_v27 }
 0x207   :  { %v291_v29 = vpop.f32.mrb[0].mxu1 }
 0x208   :  { %v292_v30 = vadd.f32 %v328_v28, %v291_v29  ;;  %v393_v31 = vpop.f32.mrb[1].mxu1 }
 0x209   :  { %v294_v32 = vpop.f32.mrb[2].mxu1 }
 0x20a   :  { %298 = vst [vmem:[#allocation8] sm:$0xff] %v292_v30  ;;  %v295_v33 = vadd.f32 %v328_v28, %v294_v32  ;;  %v394_v34 = vpop.f32.mrb[3].mxu1 }
 0x20c   :  { %299 = vst [vmem:[#allocation8 + $0x8] sm:$0xff] %v295_v33 }
 0x20d   :  { %499 = shalt.err (!%p496_p0)
}
 0x20e   :  { %s500_s10 = scalar_lea.hbm %s631_s5, 256 }
 0x20f   :  { %p501_p1 = scmp.ne.s32.totalorder %s631_s5, %s500_s10  ;;  %p504_p2 = scmp.lt.u32.totalorder %s500_s10, %s631_s5 }
 0x211   :  { %p506_p3 = pnand %p504_p2, %p501_p1 }
 0x213   :  { %509 = shalt.err (!%p506_p3)
}
 0x214   :  { %s524_s15 = smov 128   ;;  %s525_s16 = smov 8  }
 0x215   :  { %311 = dma.vmem_to_hbm [thread:$0]  %s306_s8, 256, %s631_s5, [#allocation4], %s524_s15, %s524_s15, %s525_s16  }
 0x216   :  { %514 = dma.done.wait [#allocation4], 256  }
 0x217   :  { %515 = vsyncadd [#allocation4], 4294967040 }
 0x218   :  { %315 = vsyncpa [#allocation3], 1 }
 0x219   :  { %316 = vsyncpa [#allocation6], 1 }
 0x21a   :  { %317 = vsyncpa [#allocation4], 1 }

// kernel: tpu_custom_call.1
= control target key start
LH: loop header
LB: loop body
LE: loop exit
PB: predicated region body
PF: predicated region fallthrough
CT: control target
= control target key end

     0   :  { %10 = vsyncpa [#allocation3], 0  ;;  %s626_s0 = inlined_call_operand.hbm [shape: bf16[16,128], index: 0, kind: input, shape index: {}]   ;;  %s627_s1 = inlined_call_operand.hbm [shape: bf16[128,128], index: 1, kind: input, shape index: {}]   ;;  %s628_s2 = inlined_call_operand.vmem [shape: f32[1,128], index: 2, kind: input, shape index: {}]   ;;  %s629_s3 = inlined_call_operand.hbm [shape: bf16[128,128], index: 3, kind: input, shape index: {}]   ;;  %s630_s4 = inlined_call_operand.vmem [shape: f32[1,128], index: 4, kind: input, shape index: {}]   ;;  %s631_s5 = inlined_call_operand.hbm [shape: f32[16,128], index: 5, kind: output, shape index: {}]  }
   0x1   :  { %11 = vsyncpa [#allocation6], 0 }
   0x2   :  { %12 = vsyncpa [#allocation4], 0  ;;  %s516_s18 = smov [#allocation5]   ;;  %s517_s20 = smov [#allocation2]  }
   0x3   :  { %s30_s19 = sshll.u32 %s516_s18, 4  ;;  %s18_s21 = sshll.u32 %s517_s20, 4  ;;  %s31_s19 = int_to_ptr.vmem [resolvable:$true] %s30_s19  ;;  %s556_s21 = int_to_ptr.vmem [resolvable:$true] %s18_s21 }
   0x4   :  { %s422_s24 = scalar_lea.hbm %s627_s1, 1024 }
   0x5   :  { %p423_p0 = scmp.ne.s32.totalorder %s627_s1, %s422_s24  ;;  %p426_p1 = scmp.lt.u32.totalorder %s422_s24, %s627_s1 }
   0x7   :  { %p428_p2 = pnand %p426_p1, %p423_p0 }
   0x9   :  { %431 = shalt.err (!%p428_p2)
}
   0xa   :  { %s432_s29 = scalar_lea.vmem %s31_s19, 1024  ;;  %p437_p4 = scmp.lt.s32.totalorder %s31_s19, %s31_s19 }
   0xb   :  { %p433_p3 = scmp.ne.s32.totalorder %s31_s19, %s432_s29  ;;  %p438_p5 = scmp.lt.s32.totalorder %s432_s29, %s432_s29 }
   0xd   :  { %p439_p6 = por %p438_p5, %p437_p4 }
   0xf   :  { %p440_p7 = pnand %p439_p6, %p433_p3 }
  0x11   :  { %443 = shalt.err (!%p440_p7)
}
  0x12   :  { %s518_s30 = smov 64   ;;  %s519_s6 = smov 4  }
  0x13   :  { %36 = dma.hbm_to_vmem [thread:$0]  %s627_s1, 1024, %s31_s19, [#allocation6], %s518_s30, %s518_s30, %s519_s6  }
  0x14   :  { %s444_s11 = scalar_lea.hbm %s626_s0, 128 }
  0x15   :  { %p445_p8 = scmp.ne.s32.totalorder %s626_s0, %s444_s11  ;;  %p448_p9 = scmp.lt.u32.totalorder %s444_s11, %s626_s0 }
  0x17   :  { %p450_p10 = pnand %p448_p9, %p445_p8 }
  0x19   :  { %453 = shalt.err (!%p450_p10)
}
  0x1a   :  { %s454_s16 = scalar_lea.vmem %s556_s21, 128  ;;  %p459_p12 = scmp.lt.s32.totalorder %s556_s21, %s556_s21 }
  0x1b   :  { %p455_p11 = scmp.ne.s32.totalorder %s556_s21, %s454_s16  ;;  %p460_p13 = scmp.lt.s32.totalorder %s454_s16, %s454_s16 }
  0x1d   :  { %p461_p0 = por %p460_p13, %p459_p12 }
  0x1f   :  { %p462_p1 = pnand %p461_p0, %p455_p11 }
  0x21   :  { %465 = shalt.err (!%p462_p1)
}
  0x22   :  { %24 = dma.hbm_to_vmem [thread:$0]  %s626_s0, 128, %s556_s21, [#allocation3], %s518_s30, %s518_s30, %s519_s6  }
  0x23   :  { %s520_s18 = smov [#allocation7]   ;;  %s466_s23 = scalar_lea.hbm %s629_s3, 1024 }
  0x24   :  { %s44_s19 = sshll.u32 %s520_s18, 4  ;;  %p467_p2 = scmp.ne.s32.totalorder %s629_s3, %s466_s23  ;;  %s45_s19 = int_to_ptr.vmem [resolvable:$true] %s44_s19 }
  0x25   :  { %p470_p3 = scmp.lt.u32.totalorder %s466_s23, %s629_s3 }
  0x27   :  { %p472_p4 = pnand %p470_p3, %p467_p2 }
  0x29   :  { %475 = shalt.err (!%p472_p4)
}
  0x2a   :  { %s476_s28 = scalar_lea.vmem %s45_s19, 1024  ;;  %p481_p6 = scmp.lt.s32.totalorder %s45_s19, %s45_s19 }
  0x2b   :  { %p477_p5 = scmp.ne.s32.totalorder %s45_s19, %s476_s28  ;;  %p482_p7 = scmp.lt.s32.totalorder %s476_s28, %s476_s28 }
  0x2d   :  { %p483_p8 = por %p482_p7, %p481_p6 }
  0x2f   :  { %p484_p9 = pnand %p483_p8, %p477_p5 }
  0x31   :  { %487 = shalt.err (!%p484_p9)
}
  0x32   :  { %50 = dma.hbm_to_vmem [thread:$0]  %s629_s3, 1024, %s45_s19, [#allocation6], %s518_s30, %s518_s30, %s519_s6  }
  0x33   :  { %510 = dma.done.wait [#allocation3], 128  }
  0x34   :  { %511 = vsyncadd [#allocation3], 4294967168 }
  0x35   :  { %512 = dma.done.wait [#allocation6], 2048  }
  0x36   :  { %513 = vsyncadd [#allocation6], 4294965248  ;;  %v521_v0 = vmov 0.0   ;;  %vm522_vm0 = vmmov 0   ;;  %v405_v1 = vld [vmem:[#allocation5] sm:$0xff]   ;;  %v406_v2 = vld [vmem:[#allocation5 + $0x8] sm:$0xff]  }
  0x37   :  { %355 = vmatprep.subr.bf16.mxu0 %v521_v0  ;;  %371 = vmatprep.mubr.msk.bf16.mxu0 %vm522_vm0, %v521_v0  ;;  %v407_v3 = vld [vmem:[#allocation5 + $0x10] sm:$0xff]   ;;  %v414_v4 = vld [vmem:[#allocation7] sm:$0xff]   ;;  %v408_v5 = vld [vmem:[#allocation5 + $0x18] sm:$0xff]   ;;  %s523_s7 = smov [#allocation8]  }
  0x38   :  { %375 = vmatprep.subr.bf16.mxu1 %v521_v0  ;;  %391 = vmatprep.mubr.msk.bf16.mxu1 %vm522_vm0, %v521_v0  ;;  %v415_v6 = vld [vmem:[#allocation7 + $0x8] sm:$0xff]   ;;  %v409_v7 = vld [vmem:[#allocation5 + $0x20] sm:$0xff]   ;;  %v416_v8 = vld [vmem:[#allocation7 + $0x10] sm:$0xff]   ;;  %s305_s8 = sshll.u32 %s523_s7, 4  ;;  %s306_s8 = int_to_ptr.vmem [resolvable:$true] %s305_s8 }
  0x39   :  { %356 = vmatpush3.bf16.msra.mxu0 %v405_v1  ;;  %376 = vmatpush3.bf16.msra.mxu1 %v414_v4  ;;  %v410_v9 = vld [vmem:[#allocation5 + $0x28] sm:$0xff]   ;;  %v417_v10 = vld [vmem:[#allocation7 + $0x18] sm:$0xff]   ;;  %v411_v11 = vld [vmem:[#allocation5 + $0x30] sm:$0xff]   ;;  %p493_p11 = scmp.lt.s32.totalorder %s306_s8, %s306_s8 }
  0x3a   :  { %357 = vmatprep.subr.bf16.mxu0 %v521_v0  ;;  %377 = vmatprep.subr.bf16.mxu1 %v521_v0  ;;  %v418_v12 = vld [vmem:[#allocation7 + $0x20] sm:$0xff]   ;;  %v412_v13 = vld [vmem:[#allocation5 + $0x38] sm:$0xff]   ;;  %v419_v14 = vld [vmem:[#allocation7 + $0x28] sm:$0xff]  }
  0x3b   :  { %v413_v15 = vld [vmem:[#allocation2] sm:$0xff]   ;;  %v420_v16 = vld [vmem:[#allocation7 + $0x30] sm:$0xff]  }
  0x3c   :  { %v421_v17 = vld [vmem:[#allocation7 + $0x38] sm:$0xff]  }
  0x3d   :  { %358 = vmatpush3.bf16.msra.mxu0 %v406_v2  ;;  %378 = vmatpush3.bf16.msra.mxu1 %v415_v6  ;;  %v318_v18 = vld [vmem:[%s628_s2] ss:$0 sm:$0xff]  ;;  %s488_s2 = scalar_lea.vmem %s306_s8, 256 }
  0x3e   :  { %359 = vmatprep.subr.bf16.mxu0 %v521_v0  ;;  %379 = vmatprep.subr.bf16.mxu1 %v521_v0  ;;  %v328_v28 = vld [vmem:[%s630_s4] ss:$0 sm:$0xff]  ;;  %p489_p10 = scmp.ne.s32.totalorder %s306_s8, %s488_s2  ;;  %p494_p12 = scmp.lt.s32.totalorder %s488_s2, %s488_s2 }
  0x40   :  { %p495_p13 = por %p494_p12, %p493_p11 }
  0x41   :  { %360 = vmatpush3.bf16.msra.mxu0 %v407_v3  ;;  %380 = vmatpush3.bf16.msra.mxu1 %v416_v8 }
  0x42   :  { %361 = vmatprep.subr.bf16.mxu0 %v521_v0  ;;  %381 = vmatprep.subr.bf16.mxu1 %v521_v0  ;;  %p496_p0 = pnand %p495_p13, %p489_p10 }
  0x45   :  { %362 = vmatpush3.bf16.msra.mxu0 %v408_v5  ;;  %382 = vmatpush3.bf16.msra.mxu1 %v417_v10 }
  0x46   :  { %363 = vmatprep.subr.bf16.mxu0 %v521_v0  ;;  %383 = vmatprep.subr.bf16.mxu1 %v521_v0 }
  0x49   :  { %364 = vmatpush3.bf16.msra.mxu0 %v409_v7  ;;  %384 = vmatpush3.bf16.msra.mxu1 %v418_v12 }
  0x4a   :  { %365 = vmatprep.subr.bf16.mxu0 %v521_v0  ;;  %385 = vmatprep.subr.bf16.mxu1 %v521_v0 }
  0x4d   :  { %366 = vmatpush3.bf16.msra.mxu0 %v410_v9  ;;  %386 = vmatpush3.bf16.msra.mxu1 %v419_v14 }
  0x4e   :  { %367 = vmatprep.subr.bf16.mxu0 %v521_v0  ;;  %387 = vmatprep.subr.bf16.mxu1 %v521_v0 }
  0x51   :  { %368 = vmatpush3.bf16.msra.mxu0 %v411_v11  ;;  %388 = vmatpush3.bf16.msra.mxu1 %v420_v16 }
  0x52   :  { %369 = vmatprep.subr.bf16.mxu0 %v521_v0  ;;  %389 = vmatprep.subr.bf16.mxu1 %v521_v0 }
  0x55   :  { %370 = vmatpush3.bf16.msra.mxu0 %v412_v13  ;;  %390 = vmatpush3.bf16.msra.mxu1 %v421_v17 }
  0x58   :  { %372 = vmatmul.mubr.bf16.vlgmr.msra.gmra.mrb[0].mxu0 %v413_v15 }
 0x12b   :  { %v176_v19 = vpop.f32.mrb[0].mxu0 }
 0x12c   :  { %v177_v20 = vadd.f32 %v318_v18, %v176_v19  ;;  %v373_v21 = vpop.f32.mrb[1].mxu0 }
 0x12d   :  { %v179_v22 = vpop.f32.mrb[2].mxu0 }
 0x12e   :  { %v180_v23 = vadd.f32 %v318_v18, %v179_v22  ;;  %v374_v24 = vpop.f32.mrb[3].mxu0  ;;  %v183_v25 = vmax.f32 %v177_v20, 0.0 }
 0x130   :  { %v184_v26 = vmax.f32 %v180_v23, 0.0 }
 0x132   :  { %v185_v27 = vpack.c.bf16 %v184_v26, %v183_v25 }
 0x134   :  { %392 = vmatmul.mubr.bf16.vlgmr.msra.gmra.mrb[0].mxu1 %v185_v27 }
 0x207   :  { %v291_v29 = vpop.f32.mrb[0].mxu1 }
 0x208   :  { %v292_v30 = vadd.f32 %v328_v28, %v291_v29  ;;  %v393_v31 = vpop.f32.mrb[1].mxu1 }
 0x209   :  { %v294_v32 = vpop.f32.mrb[2].mxu1 }
 0x20a   :  { %298 = vst [vmem:[#allocation8] sm:$0xff] %v292_v30  ;;  %v295_v33 = vadd.f32 %v328_v28, %v294_v32  ;;  %v394_v34 = vpop.f32.mrb[3].mxu1 }
 0x20c   :  { %299 = vst [vmem:[#allocation8 + $0x8] sm:$0xff] %v295_v33 }
 0x20d   :  { %499 = shalt.err (!%p496_p0)
}
 0x20e   :  { %s500_s10 = scalar_lea.hbm %s631_s5, 256 }
 0x20f   :  { %p501_p1 = scmp.ne.s32.totalorder %s631_s5, %s500_s10  ;;  %p504_p2 = scmp.lt.u32.totalorder %s500_s10, %s631_s5 }
 0x211   :  { %p506_p3 = pnand %p504_p2, %p501_p1 }
 0x213   :  { %509 = shalt.err (!%p506_p3)
}
 0x214   :  { %s524_s15 = smov 128   ;;  %s525_s16 = smov 8  }
 0x215   :  { %311 = dma.vmem_to_hbm [thread:$0]  %s306_s8, 256, %s631_s5, [#allocation4], %s524_s15, %s524_s15, %s525_s16  }
 0x216   :  { %514 = dma.done.wait [#allocation4], 256  }
 0x217   :  { %515 = vsyncadd [#allocation4], 4294967040 }
 0x218   :  { %315 = vsyncpa [#allocation3], 1 }
 0x219   :  { %316 = vsyncpa [#allocation6], 1 }
 0x21a   :  { %317 = vsyncpa [#allocation4], 1 }

</bundles_post_ra>
